<compile_context>
chip_gen: v5e
topology: v5e:2x2
jax: 0.10.0
libtpu: 0.0.40
codegen_flags: <defaults>
</compile_context>

<pallas_src>
import functools

import jax
import jax.numpy as jnp
from jax.experimental import pallas as pl
from jax.experimental.pallas import tpu as pltpu


def _round_up(n, m):
    return ((n + m - 1) // m) * m


def _round_down(n, m):
    return (n // m) * m


def _cdiv(a, b):
    return -(-a // b)


def _vmem_budget_bytes():
    """~60% of this generation's physical VMEM (v5e/v6e: 128 MiB, v7x: 64 MiB)."""
    try:
        cap = int(pltpu.get_tpu_info().vmem_capacity_bytes)
    except Exception:
        cap = 64 * 1024 * 1024  # conservative fallback (v7x-sized part)
    return int(0.6 * cap)


def _mlp_kernel(x_ref, w1_ref, b1_ref, w2_ref, b2_ref, w3_ref, b3_ref,
                logits_ref, probs_ref):
    """Fused 3-layer MLP + softmax for one batch tile.

    x arrives in f32 (natural width) and is cast to bf16 here; weights are
    bf16 MXU operands; accumulation and all elementwise work are f32.
    """
    x = x_ref[...].astype(jnp.bfloat16)          # (blk, in_dim)

    # h1 = relu(x @ W1 + b1)
    h1 = jnp.dot(x, w1_ref[...], preferred_element_type=jnp.float32) + b1_ref[...]
    h1 = jnp.maximum(h1, 0.0).astype(jnp.bfloat16)

    # h2 = relu(h1 @ W2 + b2)
    h2 = jnp.dot(h1, w2_ref[...], preferred_element_type=jnp.float32) + b2_ref[...]
    h2 = jnp.maximum(h2, 0.0).astype(jnp.bfloat16)

    # Dropout(p) in eval / inference mode is the identity.
    # TODO(synk): training-mode dropout (pltpu.prng_* masking) not implemented.

    # logits = h2 @ W3 + b3
    logits = jnp.dot(h2, w3_ref[...], preferred_element_type=jnp.float32) + b3_ref[...]
    logits_ref[...] = logits

    # numerically-stable softmax over the (unpadded) class axis
    m = jnp.max(logits, axis=-1, keepdims=True)
    e = jnp.exp(logits - m)
    s = jnp.sum(e, axis=-1, keepdims=True)
    probs_ref[...] = e * pl.reciprocal(s, approx=True)


def prepare_params(w1, b1, w2, b2, w3, b3):
    """One-time conversion to the kernel layout (do outside the per-call path):
    weights (in_features, out_features) bf16, biases (1, out_features) f32.
    (PyTorch stores nn.Linear weights as (out, in); transpose before calling.)
    """
    prep_w = lambda w: jnp.asarray(w, jnp.bfloat16)
    prep_b = lambda b: jnp.asarray(b, jnp.float32).reshape(1, -1)
    return (prep_w(w1), prep_b(b1), prep_w(w2), prep_b(b2), prep_w(w3), prep_b(b3))


@functools.partial(jax.jit, static_argnames=("block_b",))
def classifier_mlp_forward(x, w1, b1, w2, b2, w3, b3, *, block_b=None):
    """Fused MLP forward.  x: (B, in_dim) f32; weights (in, out) (see
    prepare_params).  Returns (logits, probs), both (B, out_dim) f32."""
    B, in_dim = x.shape
    h1d = w1.shape[1]
    h2d = w2.shape[1]
    out_dim = w3.shape[1]

    # Defensive dtype/layout normalization -- all no-ops when prepare_params()
    # was used, so nothing is re-padded or re-cast per call.
    x = jnp.asarray(x, jnp.float32)
    w1 = jnp.asarray(w1, jnp.bfloat16)
    w2 = jnp.asarray(w2, jnp.bfloat16)
    w3 = jnp.asarray(w3, jnp.bfloat16)
    b1 = jnp.asarray(b1, jnp.float32).reshape(1, h1d)
    b2 = jnp.asarray(b2, jnp.float32).reshape(1, h2d)
    b3 = jnp.asarray(b3, jnp.float32).reshape(1, out_dim)

    # ---- batch tile selection --------------------------------------------
    # per-row VMEM bytes: x tile (f32, double-buffered), both f32 outputs
    # (double-buffered), plus f32/bf16 intermediates.
    per_row = (2 * in_dim * 4
               + 2 * 2 * out_dim * 4
               + (h1d + h2d) * (4 + 2)
               + 2 * out_dim * 4)
    # resident weights/biases (BlockSpec double-buffers even constant-index
    # inputs; pl.Buffered(1) would halve this if the hidden dims ever grow).
    weight_bytes = 2 * ((in_dim * h1d + h1d * h2d + h2d * out_dim) * 2
                        + (h1d + h2d + out_dim) * 4)
    budget = _vmem_budget_bytes()

    Bp8 = _round_up(B, 8)
    if block_b is None:
        max_blk = max(8, _round_down((budget - weight_bytes) // max(per_row, 1), 8))
        max_blk = min(max_blk, 4096)      # diminishing returns past a few K rows
        # >= 2 tiles so v7x's two TensorCores both get work and the x-tile DMA
        # overlaps compute; a single tile only when the batch itself is tiny.
        min_tiles = 2 if Bp8 >= 16 else 1
        n_tiles = max(min_tiles, _cdiv(Bp8, max_blk))
        blk = _round_up(_cdiv(Bp8, n_tiles), 8)   # minimizes padded batch rows
    else:
        blk = max(8, min(_round_up(block_b, 8), Bp8))
    n_tiles = _cdiv(Bp8, blk)
    Bp = n_tiles * blk

    xp = x if Bp == B else jnp.pad(x, ((0, Bp - B), (0, 0)))

    in_specs = [
        pl.BlockSpec((blk, in_dim), lambda i: (i, 0)),    # x tile (batch-parallel)
        pl.BlockSpec((in_dim, h1d), lambda i: (0, 0)),    # W1 (resident)
        pl.BlockSpec((1, h1d), lambda i: (0, 0)),         # b1
        pl.BlockSpec((h1d, h2d), lambda i: (0, 0)),       # W2
        pl.BlockSpec((1, h2d), lambda i: (0, 0)),         # b2
        pl.BlockSpec((h2d, out_dim), lambda i: (0, 0)),   # W3
        pl.BlockSpec((1, out_dim), lambda i: (0, 0)),     # b3
    ]
    out_specs = [
        pl.BlockSpec((blk, out_dim), lambda i: (i, 0)),   # logits (true width)
        pl.BlockSpec((blk, out_dim), lambda i: (i, 0)),   # probs
    ]

    # footprint-derived scoped-VMEM limit: never below the 32 MiB default,
    # never above the capacity-derived budget used to size the tile.
    est_bytes = blk * per_row + weight_bytes + (1 << 20)
    vmem_limit = int(max(32 * 1024 * 1024, min(est_bytes, max(budget, 32 * 1024 * 1024))))

    logits_p, probs_p = pl.pallas_call(
        _mlp_kernel,
        out_shape=(
            jax.ShapeDtypeStruct((Bp, out_dim), jnp.float32),
            jax.ShapeDtypeStruct((Bp, out_dim), jnp.float32),
        ),
        grid_spec=pltpu.PrefetchScalarGridSpec(
            num_scalar_prefetch=0,
            grid=(n_tiles,),
            in_specs=in_specs,
            out_specs=out_specs,
        ),
        compiler_params=pltpu.CompilerParams(
            dimension_semantics=("parallel",),
            vmem_limit_bytes=vmem_limit,
        ),
    )(xp, w1, b1, w2, b2, w3, b3)

    # strip batch padding (no-op when B is already a multiple of blk);
    # feature dims are exact, so no post-call feature slice is needed.
    return logits_p[:B], probs_p[:B]


def _init_linear(key, fan_in, fan_out):
    """Deterministic PyTorch-style init; weight stored (in, out)."""
    kw, kb = jax.random.split(key)
    bound = 1.0 / jnp.sqrt(fan_in)
    w = jax.random.uniform(kw, (fan_in, fan_out), jnp.float32, -bound, bound)
    b = jax.random.uniform(kb, (1, fan_out), jnp.float32, -bound, bound)
    return w, b


if __name__ == "__main__":
    # small shapes consistent with the module; batch chosen so the auto-tiler
    # produces 2 tiles (keeps both v7x TensorCores busy while staying tiny).
    B, in_dim, hidden1, hidden2, out_dim = 64, 16, 32, 32, 8
    dropout_rate = 0.1  # unused at inference (identity)

    key = jax.random.PRNGKey(0)
    kx, k1, k2, k3 = jax.random.split(key, 4)

    x = jax.random.normal(kx, (B, in_dim), jnp.float32)
    w1, b1 = _init_linear(k1, in_dim, hidden1)
    w2, b2 = _init_linear(k2, hidden1, hidden2)
    w3, b3 = _init_linear(k3, hidden2, out_dim)

    # one-time layout/dtype prep (outside the per-call path)
    params = prepare_params(w1, b1, w2, b2, w3, b3)

    logits, probs = classifier_mlp_forward(x, *params)
    jax.block_until_ready((logits, probs))

    # reference in plain JAX, mirroring the bf16 MXU operands / f32 accumulate
    bf16 = jnp.bfloat16
    h = jnp.maximum(
        jnp.dot(x.astype(bf16), w1.astype(bf16),
                preferred_element_type=jnp.float32) + b1, 0.0)
    h = jnp.maximum(
        jnp.dot(h.astype(bf16), w2.astype(bf16),
                preferred_element_type=jnp.float32) + b2, 0.0)
    ref_logits = jnp.dot(h.astype(bf16), w3.astype(bf16),
                         preferred_element_type=jnp.float32) + b3
    ref_probs = jax.nn.softmax(ref_logits, axis=1)

    assert logits.shape == (B, out_dim) and probs.shape == (B, out_dim)
    assert jnp.allclose(logits, ref_logits, atol=1e-3, rtol=1e-3)
    assert jnp.allclose(probs, ref_probs, atol=2e-3, rtol=1e-2)
    assert jnp.allclose(jnp.sum(probs, axis=1), 1.0, atol=5e-3)

    print("KERNEL_OK")
</pallas_src>

<mosaic_0001>
module attributes {stable_mosaic.version = 11 : i64} {
  func.func @_mlp_kernel(%arg0: i32, %arg1: memref<32x16xf32, #tpu.memory_space<vmem>>, %arg2: memref<16x32xbf16, #tpu.memory_space<vmem>>, %arg3: memref<1x32xf32, #tpu.memory_space<vmem>>, %arg4: memref<32x32xbf16, #tpu.memory_space<vmem>>, %arg5: memref<1x32xf32, #tpu.memory_space<vmem>>, %arg6: memref<32x8xbf16, #tpu.memory_space<vmem>>, %arg7: memref<1x8xf32, #tpu.memory_space<vmem>>, %arg8: memref<32x8xf32, #tpu.memory_space<vmem>>, %arg9: memref<32x8xf32, #tpu.memory_space<vmem>>) attributes {dimension_semantics = [#tpu.dimension_semantics<parallel>], iteration_bounds = array<i64: 2>, scalar_prefetch = 0 : i64, scratch_operands = 0 : i64, tpu.core_type = #tpu.core_type<tc>, window_params = [{transform_indices = @transform_0, window_bounds = array<i64: 32, 16>}, {pipeline_mode = #tpu.pipeline_mode<synchronous>, transform_indices = @transform_1, window_bounds = array<i64: 16, 32>}, {pipeline_mode = #tpu.pipeline_mode<synchronous>, transform_indices = @transform_2, window_bounds = array<i64: 1, 32>}, {pipeline_mode = #tpu.pipeline_mode<synchronous>, transform_indices = @transform_3, window_bounds = array<i64: 32, 32>}, {pipeline_mode = #tpu.pipeline_mode<synchronous>, transform_indices = @transform_4, window_bounds = array<i64: 1, 32>}, {pipeline_mode = #tpu.pipeline_mode<synchronous>, transform_indices = @transform_5, window_bounds = array<i64: 32, 8>}, {pipeline_mode = #tpu.pipeline_mode<synchronous>, transform_indices = @transform_6, window_bounds = array<i64: 1, 8>}, {transform_indices = @transform_7, window_bounds = array<i64: 32, 8>}, {transform_indices = @transform_8, window_bounds = array<i64: 32, 8>}]} {
    %c0 = arith.constant 0 : index
    %c0_0 = arith.constant 0 : index
    %0 = vector.load %arg1[%c0, %c0_0] : memref<32x16xf32, #tpu.memory_space<vmem>>, vector<32x16xf32>
    %1 = arith.truncf %0 : vector<32x16xf32> to vector<32x16xbf16>
    %c0_1 = arith.constant 0 : index
    %c0_2 = arith.constant 0 : index
    %2 = vector.load %arg2[%c0_1, %c0_2] : memref<16x32xbf16, #tpu.memory_space<vmem>>, vector<16x32xbf16>
    %cst = arith.constant dense<0.000000e+00> : vector<32x32xf32>
    %3 = tpu.matmul %1, %2, %cst {dimension_numbers = #tpu.dot_dimension_numbers<[1], [0], [0], [1], [0, 0, 1, 1], [], []>} : vector<32x16xbf16>, vector<16x32xbf16>, vector<32x32xf32> -> vector<32x32xf32>
    %c0_3 = arith.constant 0 : index
    %c0_4 = arith.constant 0 : index
    %4 = vector.load %arg3[%c0_3, %c0_4] : memref<1x32xf32, #tpu.memory_space<vmem>>, vector<1x32xf32>
    %5 = vector.broadcast %4 : vector<1x32xf32> to vector<32x32xf32>
    %6 = arith.addf %3, %5 : vector<32x32xf32>
    %cst_5 = arith.constant 0.000000e+00 : f32
    %7 = vector.broadcast %cst_5 : f32 to vector<32x32xf32>
    %8 = arith.maximumf %6, %7 : vector<32x32xf32>
    %9 = arith.truncf %8 : vector<32x32xf32> to vector<32x32xbf16>
    %c0_6 = arith.constant 0 : index
    %c0_7 = arith.constant 0 : index
    %10 = vector.load %arg4[%c0_6, %c0_7] : memref<32x32xbf16, #tpu.memory_space<vmem>>, vector<32x32xbf16>
    %cst_8 = arith.constant dense<0.000000e+00> : vector<32x32xf32>
    %11 = tpu.matmul %9, %10, %cst_8 {dimension_numbers = #tpu.dot_dimension_numbers<[1], [0], [0], [1], [0, 0, 1, 1], [], []>} : vector<32x32xbf16>, vector<32x32xbf16>, vector<32x32xf32> -> vector<32x32xf32>
    %c0_9 = arith.constant 0 : index
    %c0_10 = arith.constant 0 : index
    %12 = vector.load %arg5[%c0_9, %c0_10] : memref<1x32xf32, #tpu.memory_space<vmem>>, vector<1x32xf32>
    %13 = vector.broadcast %12 : vector<1x32xf32> to vector<32x32xf32>
    %14 = arith.addf %11, %13 : vector<32x32xf32>
    %cst_11 = arith.constant 0.000000e+00 : f32
    %15 = vector.broadcast %cst_11 : f32 to vector<32x32xf32>
    %16 = arith.maximumf %14, %15 : vector<32x32xf32>
    %17 = arith.truncf %16 : vector<32x32xf32> to vector<32x32xbf16>
    %c0_12 = arith.constant 0 : index
    %c0_13 = arith.constant 0 : index
    %18 = vector.load %arg6[%c0_12, %c0_13] : memref<32x8xbf16, #tpu.memory_space<vmem>>, vector<32x8xbf16>
    %cst_14 = arith.constant dense<0.000000e+00> : vector<32x8xf32>
    %19 = tpu.matmul %17, %18, %cst_14 {dimension_numbers = #tpu.dot_dimension_numbers<[1], [0], [0], [1], [0, 0, 1, 1], [], []>} : vector<32x32xbf16>, vector<32x8xbf16>, vector<32x8xf32> -> vector<32x8xf32>
    %c0_15 = arith.constant 0 : index
    %c0_16 = arith.constant 0 : index
    %20 = vector.load %arg7[%c0_15, %c0_16] : memref<1x8xf32, #tpu.memory_space<vmem>>, vector<1x8xf32>
    %21 = vector.broadcast %20 : vector<1x8xf32> to vector<32x8xf32>
    %22 = arith.addf %19, %21 : vector<32x8xf32>
    %c0_17 = arith.constant 0 : index
    %c0_18 = arith.constant 0 : index
    %23 = vector.load %arg8[%c0_17, %c0_18] : memref<32x8xf32, #tpu.memory_space<vmem>>, vector<32x8xf32>
    tpu.vector_store %arg8[%c0_17, %c0_18], %22 {strides = array<i32>} : memref<32x8xf32, #tpu.memory_space<vmem>>, vector<32x8xf32>,
    %cst_19 = arith.constant dense<0xFF800000> : vector<32xf32>
    %24 = vector.multi_reduction <maximumf>, %22, %cst_19 [1] : vector<32x8xf32> to vector<32xf32>
    %25 = vector.shape_cast %24 : vector<32xf32> to vector<32x1xf32>
    %26 = vector.broadcast %25 : vector<32x1xf32> to vector<32x8xf32>
    %27 = arith.subf %22, %26 : vector<32x8xf32>
    %28 = math.exp %27 : vector<32x8xf32>
    %cst_20 = arith.constant dense<0.000000e+00> : vector<32xf32>
    %29 = vector.multi_reduction <add>, %28, %cst_20 [1] : vector<32x8xf32> to vector<32xf32>
    %30 = vector.shape_cast %29 : vector<32xf32> to vector<32x1xf32>
    %31 = tpu.reciprocal %30 {approx = true} : vector<32x1xf32> -> vector<32x1xf32>
    %32 = vector.broadcast %31 : vector<32x1xf32> to vector<32x8xf32>
    %33 = arith.mulf %28, %32 : vector<32x8xf32>
    %c0_21 = arith.constant 0 : index
    %c0_22 = arith.constant 0 : index
    %34 = vector.load %arg9[%c0_21, %c0_22] : memref<32x8xf32, #tpu.memory_space<vmem>>, vector<32x8xf32>
    tpu.vector_store %arg9[%c0_21, %c0_22], %33 {strides = array<i32>} : memref<32x8xf32, #tpu.memory_space<vmem>>, vector<32x8xf32>,
    return
  }
  func.func @transform_0(%arg0: i32) -> (i32, i32) {
    %c0_i32 = arith.constant 0 : i32
    %c0_i32_0 = arith.constant 0 : i32
    return %arg0, %c0_i32 : i32, i32
  }
  func.func @transform_1(%arg0: i32) -> (i32, i32) {
    %c0_i32 = arith.constant 0 : i32
    %c0_i32_0 = arith.constant 0 : i32
    %c0_i32_1 = arith.constant 0 : i32
    return %c0_i32, %c0_i32_0 : i32, i32
  }
  func.func @transform_2(%arg0: i32) -> (i32, i32) {
    %c0_i32 = arith.constant 0 : i32
    %c0_i32_0 = arith.constant 0 : i32
    %c0_i32_1 = arith.constant 0 : i32
    return %c0_i32, %c0_i32_0 : i32, i32
  }
  func.func @transform_3(%arg0: i32) -> (i32, i32) {
    %c0_i32 = arith.constant 0 : i32
    %c0_i32_0 = arith.constant 0 : i32
    %c0_i32_1 = arith.constant 0 : i32
    return %c0_i32, %c0_i32_0 : i32, i32
  }
  func.func @transform_4(%arg0: i32) -> (i32, i32) {
    %c0_i32 = arith.constant 0 : i32
    %c0_i32_0 = arith.constant 0 : i32
    %c0_i32_1 = arith.constant 0 : i32
    return %c0_i32, %c0_i32_0 : i32, i32
  }
  func.func @transform_5(%arg0: i32) -> (i32, i32) {
    %c0_i32 = arith.constant 0 : i32
    %c0_i32_0 = arith.constant 0 : i32
    %c0_i32_1 = arith.constant 0 : i32
    return %c0_i32, %c0_i32_0 : i32, i32
  }
  func.func @transform_6(%arg0: i32) -> (i32, i32) {
    %c0_i32 = arith.constant 0 : i32
    %c0_i32_0 = arith.constant 0 : i32
    %c0_i32_1 = arith.constant 0 : i32
    return %c0_i32, %c0_i32_0 : i32, i32
  }
  func.func @transform_7(%arg0: i32) -> (i32, i32) {
    %c0_i32 = arith.constant 0 : i32
    %c0_i32_0 = arith.constant 0 : i32
    return %arg0, %c0_i32 : i32, i32
  }
  func.func @transform_8(%arg0: i32) -> (i32, i32) {
    %c0_i32 = arith.constant 0 : i32
    %c0_i32_0 = arith.constant 0 : i32
    return %arg0, %c0_i32 : i32, i32
  }
}

</mosaic_0001>

<bundles_post_ra>
// kernel: classifier_mlp_forward.1
= control target key start
LH: loop header
LB: loop body
LE: loop exit
PB: predicated region body
PF: predicated region fallthrough
CT: control target
= control target key end

     0   :  { %s740_s27 = smov 0   ;;  %s809_s0 = inlined_call_operand.vmem [shape: f32[64,16], index: 0, kind: input, shape index: {}]   ;;  %s810_s1 = inlined_call_operand.vmem [shape: bf16[16,32], index: 1, kind: input, shape index: {}]   ;;  %s811_s2 = inlined_call_operand.vmem [shape: f32[1,32], index: 2, kind: input, shape index: {}]   ;;  %s812_s3 = inlined_call_operand.vmem [shape: bf16[32,32], index: 3, kind: input, shape index: {}]   ;;  %s813_s4 = inlined_call_operand.vmem [shape: f32[1,32], index: 4, kind: input, shape index: {}]   ;;  %s814_s5 = inlined_call_operand.vmem [shape: bf16[32,8], index: 5, kind: input, shape index: {}]   ;;  %s815_s6 = inlined_call_operand.vmem [shape: f32[1,8], index: 6, kind: input, shape index: {}]   ;;  %s816_s7 = inlined_call_operand.vmem [shape: f32[64,8], index: 7, kind: output, shape index: {0}]   ;;  %s817_s8 = inlined_call_operand.vmem [shape: f32[64,8], index: 8, kind: output, shape index: {1}]  }
   0x1 LB: > { %s614_s28 = sadd.s32 4294967295, %s693_s27   ;;  %p618_p0 = scmp.ge.s32.totalorder %s693_s27, 1  ;;  %s693_s27 = sphi %s740_s27, %s19_s27  }
   0x2   : > { %p266_p1 = scmp.lt.s32.totalorder %s693_s27, 3 }
   0x4   : > { %p267_p2 = pnand %p618_p0, %p266_p1 }
   0x5   : > { %s619_s9 = sshll.u32 (!%p267_p2), %s614_s28, 2 }
   0x6   : > { %270 = sbr.rel (%p267_p2) target bundleno = 716 (0x2cc), region = 48  ;;  %p306_p3 = scmp.lt.s32.totalorder (!%p267_p2), %s619_s9, 7 }
   0xb   : > { %v653_v0 = vld [vmem:[%s810_s1] sm:$0xff]  ;;  %s819_s9 = smov (!%p306_p3, %s619_s9), 7  ;;  %vm342_vm0 = vcmask 130048   ;;  %v655_v7 = vld [vmem:[%s812_s3 + $0x8] sm:$0xff]  ;;  %vm394_vm1 = vcmask 261120   ;;  %vm471_vm2 = vcmask 64512  }
   0xc   : > { %356 = vmatpush.bf16.msra.mxu0 %v653_v0  ;;  %s751_s10 = sshll.u32 %s819_s9, 3  ;;  %407 = vmatpush.bf16.msra.mxu1 %v655_v7  ;;  %v654_v8 = vld [vmem:[%s812_s3] sm:$0xff]  ;;  %v657_v24 = vld [vmem:[%s814_s5 + $0x8] sm:$0xff] }
   0xd   : > { %s309_s13 = scalar_lea.vmem %s809_s0, %s751_s10  ;;  %658 = vmatpush.bf16.msra.mxu3 %v655_v7  ;;  %v668_v10 = vld [vmem:[%s811_s2] ss:$0 sm:$0xff]  ;;  %458 = vmatpush.bf16.msra.mxu2 %v657_v24  ;;  %s315_s9 = scalar_lea.vmem %s816_s7, %s751_s10 }
   0xe   : > { %v324_v1 = vld [vmem:[%s309_s13] sm:$0xff]  ;;  %v325_v2 = vld [vmem:[%s309_s13 + $0x8] sm:$0xff]  ;;  %v326_v4 = vld [vmem:[%s309_s13 + $0x10] sm:$0xff] }
   0xf   : > { %v328_v3 = vpack.c.bf16 %v325_v2, %v324_v1  ;;  %v327_v5 = vld [vmem:[%s309_s13 + $0x18] sm:$0xff]  ;;  %v656_v25 = vld [vmem:[%s814_s5] sm:$0xff]  ;;  %s321_s13 = scalar_lea.vmem %s817_s8, %s751_s10 }
  0x10   : > { %v329_v6 = vpack.c.bf16 %v327_v5, %v326_v4  ;;  %408 = vmatpush.bf16.msra.mxu1 %v654_v8  ;;  %v669_v27 = vld [vmem:[%s813_s4] ss:$0 sm:$0xff] }
  0x11   : > { %629 = vmatmul.msk.bf16.vlgmr.msra.gmra.mxu0 %vm342_vm0, %v328_v3  ;;  %659 = vmatpush.bf16.msra.mxu3 %v654_v8  ;;  %v670_v41 = vld [vmem:[%s815_s6] ss:$0 sm:$0xff] }
  0x12   : > { %459 = vmatpush.bf16.msra.mxu2 %v656_v25 }
  0x21   : > { %630 = vmatmul.msk.bf16.gmra.mxu0 %vm342_vm0, %v329_v6 }
  0x8e   : > { %v358_v9 = vpop.f32.mrf.mxu0 }
  0x8f   : > { %v359_v11 = vadd.f32 %v668_v10, %v358_v9 }
  0x91   : > { %v368_v14 = vmax.f32 %v359_v11, 0.0 }
  0x96   : > { %v360_v12 = vpop.f32.mrf.mxu0 }
  0x97   : > { %v361_v13 = vadd.f32 %v668_v10, %v360_v12 }
  0x99   : > { %v369_v15 = vmax.f32 %v361_v13, 0.0 }
  0x9b   : > { %v372_v16 = vpack.c.bf16 %v369_v15, %v368_v14 }
  0x9d   : > { %639 = vmatmul.msk.bf16.vlgmr.msra.gmra.mxu1 %vm394_vm1, %v372_v16 }
  0x9e   : > { %v363_v17 = vpop.f32.mrf.mxu0 }
  0x9f   : > { %v364_v18 = vadd.f32 %v668_v10, %v363_v17 }
  0xa1   : > { %v370_v21 = vmax.f32 %v364_v18, 0.0 }
  0xa6   : > { %v365_v19 = vpop.f32.mrf.mxu0 }
  0xa7   : > { %v366_v20 = vadd.f32 %v668_v10, %v365_v19 }
  0xa9   : > { %v371_v22 = vmax.f32 %v366_v20, 0.0 }
  0xab   : > { %v373_v23 = vpack.c.bf16 %v371_v22, %v370_v21 }
  0xad   : > { %640 = vmatmul.msk.bf16.vlgmr.msra.gmra.mxu3 %vm394_vm1, %v373_v23 }
 0x11a   : > { %v410_v26 = vpop.f32.mrf.mxu1 }
 0x11b   : > { %v411_v28 = vadd.f32 %v669_v27, %v410_v26 }
 0x11d   : > { %v420_v31 = vmax.f32 %v411_v28, 0.0 }
 0x122   : > { %v412_v29 = vpop.f32.mrf.mxu1 }
 0x123   : > { %v413_v30 = vadd.f32 %v669_v27, %v412_v29 }
 0x125   : > { %v421_v32 = vmax.f32 %v413_v30, 0.0 }
 0x127   : > { %v424_v33 = vpack.c.bf16 %v421_v32, %v420_v31 }
 0x129   : > { %649 = vmatmul.msk.bf16.vlgmr.msra.gmra.mxu2 %vm394_vm1, %v424_v33 }
 0x130   : > { %v415_v34 = vpop.f32.mrf.mxu3 }
 0x131   : > { %v416_v35 = vadd.f32 %v669_v27, %v415_v34 }
 0x133   : > { %v422_v38 = vmax.f32 %v416_v35, 0.0 }
 0x138   : > { %v417_v36 = vpop.f32.mrf.mxu3 }
 0x139   : > { %v418_v37 = vadd.f32 %v669_v27, %v417_v36 }
 0x13b   : > { %v423_v39 = vmax.f32 %v418_v37, 0.0 }
 0x13d   : > { %v425_v40 = vpack.c.bf16 %v423_v39, %v422_v38 }
 0x13f   : > { %650 = vmatmul.msk.bf16.gmra.mxu2 %vm394_vm1, %v425_v40 }
 0x1ac   : > { %v461_v42 = vpop.f32.mrf.mxu2 }
 0x1ad   : > { %v462_v43 = vadd.f32 %v670_v41, %v461_v42 }
 0x1af   : > { %472 = vst.msk [vmem:[%s315_s9] sm:$0xff] %vm471_vm2, %v462_v43  ;;  %v476_v44 = vsel %vm471_vm2, %v462_v43, -inf }
 0x1b0   : > { %477 = vmax.xlane.f32.xlu0 %v476_v44 }
 0x1b4   : > { %v463_v45 = vpop.f32.mrf.mxu2 }
 0x1b5   : > { %v464_v46 = vadd.f32 %v670_v41, %v463_v45 }
 0x1b7   : > { %473 = vst.msk [vmem:[%s315_s9 + $0x8] sm:$0xff] %vm471_vm2, %v464_v46  ;;  %v479_v47 = vsel %vm471_vm2, %v464_v46, -inf }
 0x1b8   : > { %480 = vmax.xlane.f32.xlu0 %v479_v47 }
 0x1c2   : > { %v466_v48 = vpop.f32.mrf.mxu2 }
 0x1c3   : > { %v467_v49 = vadd.f32 %v670_v41, %v466_v48 }
 0x1c5   : > { %474 = vst.msk [vmem:[%s315_s9 + $0x10] sm:$0xff] %vm471_vm2, %v467_v49  ;;  %v482_v50 = vsel %vm471_vm2, %v467_v49, -inf }
 0x1c6   : > { %483 = vmax.xlane.f32.xlu1 %v482_v50 }
 0x1ca   : > { %v468_v51 = vpop.f32.mrf.mxu2 }
 0x1cb   : > { %v469_v52 = vadd.f32 %v670_v41, %v468_v51 }
 0x1cd   : > { %475 = vst.msk [vmem:[%s315_s9 + $0x18] sm:$0xff] %vm471_vm2, %v469_v52  ;;  %v485_v53 = vsel %vm471_vm2, %v469_v52, -inf }
 0x1ce   : > { %486 = vmax.xlane.f32.xlu1 %v485_v53 }
 0x223   : > { %v478_v54 = vpop.xlane.xlu0 %477 }
 0x224   : > { %v488_v55 = vsub.f32 %v462_v43, %v478_v54 }
 0x226   : > { %v492_v56 = vmul.f32 1.442695, %v488_v55 }
 0x228   : > { %671 = vpow2.f32 %v492_v56 }
 0x22b   : > { %v481_v57 = vpop.xlane.xlu0 %480 }
 0x22c   : > { %v489_v58 = vsub.f32 %v464_v46, %v481_v57 }
 0x22e   : > { %v672_v59 = vpop.eup %671  ;;  %v494_v60 = vmul.f32 1.442695, %v489_v58 }
 0x22f   : > { %v500_v61 = vsel %vm471_vm2, %v672_v59, 0.0 }
 0x230   : > { %673 = vpow2.f32 %v494_v60  ;;  %501 = vadd.xlane.f32.xlu2 %v500_v61 }
 0x236   : > { %v674_v62 = vpop.eup %673 }
 0x237   : > { %v503_v63 = vsel %vm471_vm2, %v674_v62, 0.0 }
 0x238   : > { %504 = vadd.xlane.f32.xlu2 %v503_v63 }
 0x239   : > { %v484_v0 = vpop.xlane.xlu1 %483 }
 0x23a   : > { %v490_v1 = vsub.f32 %v467_v49, %v484_v0 }
 0x23c   : > { %v496_v2 = vmul.f32 1.442695, %v490_v1 }
 0x23e   : > { %675 = vpow2.f32 %v496_v2 }
 0x241   : > { %v487_v3 = vpop.xlane.xlu1 %486 }
 0x242   : > { %v491_v4 = vsub.f32 %v469_v52, %v487_v3 }
 0x244   : > { %v676_v5 = vpop.eup %675  ;;  %v498_v6 = vmul.f32 1.442695, %v491_v4 }
 0x245   : > { %v506_v7 = vsel %vm471_vm2, %v676_v5, 0.0 }
 0x246   : > { %677 = vpow2.f32 %v498_v6  ;;  %507 = vadd.xlane.f32.xlu0 %v506_v7 }
 0x24c   : > { %v678_v8 = vpop.eup %677 }
 0x24d   : > { %v509_v9 = vsel %vm471_vm2, %v678_v8, 0.0 }
 0x24e   : > { %510 = vadd.xlane.f32.xlu1 %v509_v9 }
 0x2a3   : > { %v502_v10 = vpop.xlane.xlu2 %501 }
 0x2a4   : > { %679 = vrcp.f32 %v502_v10 }
 0x2aa   : > { %v680_v11 = vpop.eup %679 }
 0x2ab   : > { %v516_v12 = vmul.f32 %v680_v11, %v672_v59  ;;  %v505_v13 = vpop.xlane.xlu2 %504 }
 0x2ac   : > { %681 = vrcp.f32 %v505_v13 }
 0x2ad   : > { %520 = vst.msk [vmem:[%s321_s13] sm:$0xff] %vm471_vm2, %v516_v12 }
 0x2b2   : > { %v682_v14 = vpop.eup %681 }
 0x2b3   : > { %v517_v15 = vmul.f32 %v682_v14, %v674_v62 }
 0x2b5   : > { %521 = vst.msk [vmem:[%s321_s13 + $0x8] sm:$0xff] %vm471_vm2, %v517_v15 }
 0x2b9   : > { %v508_v16 = vpop.xlane.xlu0 %507 }
 0x2ba   : > { %683 = vrcp.f32 %v508_v16 }
 0x2c0   : > { %v684_v17 = vpop.eup %683 }
 0x2c1   : > { %v518_v18 = vmul.f32 %v684_v17, %v676_v5  ;;  %v511_v19 = vpop.xlane.xlu1 %510 }
 0x2c2   : > { %685 = vrcp.f32 %v511_v19 }
 0x2c3   : > { %522 = vst.msk [vmem:[%s321_s13 + $0x10] sm:$0xff] %vm471_vm2, %v518_v18 }
 0x2c8   : > { %v686_v20 = vpop.eup %685 }
 0x2c9   : > { %v519_v21 = vmul.f32 %v686_v20, %v678_v8 }
 0x2cb   : > { %523 = vst.msk [vmem:[%s321_s13 + $0x18] sm:$0xff] %vm471_vm2, %v519_v21 }
 0x2cc PF: > { %s19_s27 = sadd.s32 1, %s693_s27  }
 0x2cd   : > { %p16_p4 = scmp.ge.s32.totalorder %s19_s27, 4  }
 0x2cf   :  { %18 = sbr.rel (!%p16_p4) target bundleno = 1 (0x1), region = 90 }

</bundles_post_ra>
